<compile_context>
chip_gen: v7x
topology: tpu7x:2x2x1
jax: 0.10.0
libtpu: 0.0.40
codegen_flags: <defaults>
</compile_context>

<pallas_src>
import functools

import jax
import jax.numpy as jnp
from jax.experimental import pallas as pl
from jax.experimental.pallas import tpu as pltpu

_LANES = 128
_SUBLANES = 8
_MAX_BLOCK_ROWS = 2048  # 2048*128*4B = 1 MiB per f32 input tile (x3 inputs, x2 buffers)


# ------------------------------------------------------------------------- #
# Kernel
# ------------------------------------------------------------------------- #
def _l1l2_kernel(x_ref, y_ref, m_ref, out_ref, s1_ref, s2_ref, cnt_ref, *, lamda):
    """Fused masked L1 + L2 reduction over a 1-D tile grid."""
    i = pl.program_id(0)

    @pl.when(i == 0)
    def _():
        s1_ref[...] = jnp.zeros_like(s1_ref)
        s2_ref[...] = jnp.zeros_like(s2_ref)
        cnt_ref[...] = jnp.zeros_like(cnt_ref)

    # Native-dtype tiles in VMEM; cast to f32 only for the accumulation math.
    m = m_ref[...].astype(jnp.float32)
    d = (x_ref[...].astype(jnp.float32) - y_ref[...].astype(jnp.float32)) * m

    s1_ref[...] += jnp.sum(jnp.abs(d), keepdims=True)   # sum |input - target| over mask
    s2_ref[...] += jnp.sum(d * d, keepdims=True)        # sum (input - target)^2 over mask
    cnt_ref[...] += jnp.sum(m, keepdims=True)           # sum(mask)

    @pl.when(i == pl.num_programs(0) - 1)
    def _():
        out_ref[...] = (s1_ref[...] + lamda * s2_ref[...]) / cnt_ref[...]


# ------------------------------------------------------------------------- #
# Wrapper
# ------------------------------------------------------------------------- #
def l1l2_loss_pallas(input, target, mask, *, lamda=0.5):
    assert input.shape == target.shape == mask.shape
    n = input.size

    rows = pl.cdiv(n, _LANES)
    block_rows = min(_MAX_BLOCK_ROWS, pl.cdiv(rows, _SUBLANES) * _SUBLANES)
    rows_padded = pl.cdiv(rows, block_rows) * block_rows
    total = rows_padded * _LANES

    def prep(a):
        flat = a.reshape(-1)
        if total != n:
            flat = jnp.pad(flat, (0, total - n))  # zero pad (mask pad -> 0 contribution)
        return flat.reshape(rows_padded, _LANES)

    # Keep input/target in their native dtype for the HBM stream; mask ({0,1})
    # is cast to the same dtype so the padded tail contributes exactly zero.
    xf = prep(input)
    yf = prep(target)
    mf = prep(mask.astype(input.dtype))

    grid = (rows_padded // block_rows,)
    blk = lambda i: (i, 0)
    kernel = functools.partial(_l1l2_kernel, lamda=float(lamda))

    out = pl.pallas_call(
        kernel,
        out_shape=jax.ShapeDtypeStruct((1, 1), jnp.float32),
        grid_spec=pltpu.PrefetchScalarGridSpec(
            num_scalar_prefetch=0,
            grid=grid,
            in_specs=[
                pl.BlockSpec((block_rows, _LANES), blk),
                pl.BlockSpec((block_rows, _LANES), blk),
                pl.BlockSpec((block_rows, _LANES), blk),
            ],
            out_specs=pl.BlockSpec((1, 1), lambda i: (0, 0)),
            scratch_shapes=[
                pltpu.VMEM((1, 1), jnp.float32),  # sum |d|
                pltpu.VMEM((1, 1), jnp.float32),  # sum d^2
                pltpu.VMEM((1, 1), jnp.float32),  # count
            ],
        ),
        compiler_params=pltpu.CompilerParams(
            dimension_semantics=("arbitrary",),   # single reduction axis
            vmem_limit_bytes=32 * 1024 * 1024,    # raise v5e's 16 MiB default
        ),
    )(xf, yf, mf)

    # PyTorch: scalar l1 + tensor([0.5]) * l2 -> shape (1,)
    return out[:, 0]


class l1l2Loss:
    """JAX/Pallas port of the PyTorch l1l2Loss module."""

    def __init__(self):
        # TODO(synk): PyTorch stores `lamda` as a CUDA tensor([0.5]); here it
        # is baked into the fused kernel as a compile-time constant.
        self.lamda = 0.5

    def forward(self, input, target, mask):
        return l1l2_loss_pallas(input, target, mask, lamda=self.lamda)

    __call__ = forward


# ------------------------------------------------------------------------- #
# Demo / self-check
# ------------------------------------------------------------------------- #
if __name__ == "__main__":
    key = jax.random.PRNGKey(0)
    k_x, k_y, k_m = jax.random.split(key, 3)

    shape = (2, 4, 16, 16)
    x = jax.random.normal(k_x, shape, dtype=jnp.float32)
    y = jax.random.normal(k_y, shape, dtype=jnp.float32)
    mask = jax.random.bernoulli(k_m, 0.5, shape)  # bool mask, same shape

    module = l1l2Loss()
    loss = jax.block_until_ready(module(x, y, mask))

    # Pure-JAX reference (same math as the PyTorch module).
    mf = mask.astype(jnp.float32)
    count = jnp.sum(mf)
    d = (x - y) * mf
    ref = jnp.sum(jnp.abs(d)) / count + 0.5 * (jnp.sum(d * d) / count)

    assert loss.shape == (1,)
    assert jnp.allclose(loss[0], ref, rtol=1e-5, atol=1e-6), (loss, ref)

    print("KERNEL_OK")
</pallas_src>

<mosaic_0001>
module attributes {stable_mosaic.version = 11 : i64} {
  func.func @_l1l2_kernel(%arg0: i32, %arg1: memref<16x128xf32, #tpu.memory_space<vmem>>, %arg2: memref<16x128xf32, #tpu.memory_space<vmem>>, %arg3: memref<16x128xf32, #tpu.memory_space<vmem>>, %arg4: memref<1x1xf32, #tpu.memory_space<vmem>>, %arg5: memref<1x1xf32, #tpu.memory_space<vmem>>, %arg6: memref<1x1xf32, #tpu.memory_space<vmem>>, %arg7: memref<1x1xf32, #tpu.memory_space<vmem>>) attributes {dimension_semantics = [#tpu.dimension_semantics<arbitrary>], iteration_bounds = array<i64: 1>, scalar_prefetch = 0 : i64, scratch_operands = 3 : i64, tpu.core_type = #tpu.core_type<tc>, window_params = [{transform_indices = @transform_0, window_bounds = array<i64: 16, 128>}, {transform_indices = @transform_1, window_bounds = array<i64: 16, 128>}, {transform_indices = @transform_2, window_bounds = array<i64: 16, 128>}, {pipeline_mode = #tpu.pipeline_mode<synchronous>, transform_indices = @transform_3, window_bounds = array<i64: 1, 1>}]} {
    %c0_i32 = arith.constant 0 : i32
    %0 = arith.cmpi eq, %arg0, %c0_i32 : i32
    %1 = arith.extui %0 : i1 to i32
    %c0_i32_0 = arith.constant 0 : i32
    %2 = arith.cmpi ne, %1, %c0_i32_0 : i32
    scf.if %2 {
      %cst_22 = arith.constant 0.000000e+00 : f32
      %37 = vector.broadcast %cst_22 : f32 to vector<1x1xf32>
      %c0_23 = arith.constant 0 : index
      %c0_24 = arith.constant 0 : index
      %38 = vector.load %arg5[%c0_23, %c0_24] : memref<1x1xf32, #tpu.memory_space<vmem>>, vector<1x1xf32>
      tpu.vector_store %arg5[%c0_23, %c0_24], %37 {strides = array<i32>} : memref<1x1xf32, #tpu.memory_space<vmem>>, vector<1x1xf32>,
      %cst_25 = arith.constant 0.000000e+00 : f32
      %39 = vector.broadcast %cst_25 : f32 to vector<1x1xf32>
      %c0_26 = arith.constant 0 : index
      %c0_27 = arith.constant 0 : index
      %40 = vector.load %arg6[%c0_26, %c0_27] : memref<1x1xf32, #tpu.memory_space<vmem>>, vector<1x1xf32>
      tpu.vector_store %arg6[%c0_26, %c0_27], %39 {strides = array<i32>} : memref<1x1xf32, #tpu.memory_space<vmem>>, vector<1x1xf32>,
      %cst_28 = arith.constant 0.000000e+00 : f32
      %41 = vector.broadcast %cst_28 : f32 to vector<1x1xf32>
      %c0_29 = arith.constant 0 : index
      %c0_30 = arith.constant 0 : index
      %42 = vector.load %arg7[%c0_29, %c0_30] : memref<1x1xf32, #tpu.memory_space<vmem>>, vector<1x1xf32>
      tpu.vector_store %arg7[%c0_29, %c0_30], %41 {strides = array<i32>} : memref<1x1xf32, #tpu.memory_space<vmem>>, vector<1x1xf32>,
    } else {
    }
    %c0 = arith.constant 0 : index
    %c0_1 = arith.constant 0 : index
    %3 = vector.load %arg3[%c0, %c0_1] : memref<16x128xf32, #tpu.memory_space<vmem>>, vector<16x128xf32>
    %c0_2 = arith.constant 0 : index
    %c0_3 = arith.constant 0 : index
    %4 = vector.load %arg1[%c0_2, %c0_3] : memref<16x128xf32, #tpu.memory_space<vmem>>, vector<16x128xf32>
    %c0_4 = arith.constant 0 : index
    %c0_5 = arith.constant 0 : index
    %5 = vector.load %arg2[%c0_4, %c0_5] : memref<16x128xf32, #tpu.memory_space<vmem>>, vector<16x128xf32>
    %6 = arith.subf %4, %5 : vector<16x128xf32>
    %7 = arith.mulf %6, %3 : vector<16x128xf32>
    %c0_6 = arith.constant 0 : index
    %c0_7 = arith.constant 0 : index
    %8 = vector.load %arg5[%c0_6, %c0_7] : memref<1x1xf32, #tpu.memory_space<vmem>>, vector<1x1xf32>
    %9 = math.absf %7 : vector<16x128xf32>
    %10 = vector.shape_cast %9 : vector<16x128xf32> to vector<1x16x128xf32>
    %cst = arith.constant dense<0.000000e+00> : vector<1xf32>
    %11 = vector.multi_reduction <add>, %10, %cst [1, 2] : vector<1x16x128xf32> to vector<1xf32>
    %12 = vector.shape_cast %11 : vector<1xf32> to vector<1x1x1xf32>
    %13 = vector.extract %12[0, 0, 0] : f32 from vector<1x1x1xf32>
    %14 = vector.broadcast %13 : f32 to vector<1x1xf32>
    %15 = arith.addf %8, %14 : vector<1x1xf32>
    %c0_8 = arith.constant 0 : index
    %c0_9 = arith.constant 0 : index
    %16 = vector.load %arg5[%c0_8, %c0_9] : memref<1x1xf32, #tpu.memory_space<vmem>>, vector<1x1xf32>
    tpu.vector_store %arg5[%c0_8, %c0_9], %15 {strides = array<i32>} : memref<1x1xf32, #tpu.memory_space<vmem>>, vector<1x1xf32>,
    %c0_10 = arith.constant 0 : index
    %c0_11 = arith.constant 0 : index
    %17 = vector.load %arg6[%c0_10, %c0_11] : memref<1x1xf32, #tpu.memory_space<vmem>>, vector<1x1xf32>
    %18 = arith.mulf %7, %7 : vector<16x128xf32>
    %19 = vector.shape_cast %18 : vector<16x128xf32> to vector<1x16x128xf32>
    %cst_12 = arith.constant dense<0.000000e+00> : vector<1xf32>
    %20 = vector.multi_reduction <add>, %19, %cst_12 [1, 2] : vector<1x16x128xf32> to vector<1xf32>
    %21 = vector.shape_cast %20 : vector<1xf32> to vector<1x1x1xf32>
    %22 = vector.extract %21[0, 0, 0] : f32 from vector<1x1x1xf32>
    %23 = vector.broadcast %22 : f32 to vector<1x1xf32>
    %24 = arith.addf %17, %23 : vector<1x1xf32>
    %c0_13 = arith.constant 0 : index
    %c0_14 = arith.constant 0 : index
    %25 = vector.load %arg6[%c0_13, %c0_14] : memref<1x1xf32, #tpu.memory_space<vmem>>, vector<1x1xf32>
    tpu.vector_store %arg6[%c0_13, %c0_14], %24 {strides = array<i32>} : memref<1x1xf32, #tpu.memory_space<vmem>>, vector<1x1xf32>,
    %c0_15 = arith.constant 0 : index
    %c0_16 = arith.constant 0 : index
    %26 = vector.load %arg7[%c0_15, %c0_16] : memref<1x1xf32, #tpu.memory_space<vmem>>, vector<1x1xf32>
    %27 = vector.shape_cast %3 : vector<16x128xf32> to vector<1x16x128xf32>
    %cst_17 = arith.constant dense<0.000000e+00> : vector<1xf32>
    %28 = vector.multi_reduction <add>, %27, %cst_17 [1, 2] : vector<1x16x128xf32> to vector<1xf32>
    %29 = vector.shape_cast %28 : vector<1xf32> to vector<1x1x1xf32>
    %30 = vector.extract %29[0, 0, 0] : f32 from vector<1x1x1xf32>
    %31 = vector.broadcast %30 : f32 to vector<1x1xf32>
    %32 = arith.addf %26, %31 : vector<1x1xf32>
    %c0_18 = arith.constant 0 : index
    %c0_19 = arith.constant 0 : index
    %33 = vector.load %arg7[%c0_18, %c0_19] : memref<1x1xf32, #tpu.memory_space<vmem>>, vector<1x1xf32>
    tpu.vector_store %arg7[%c0_18, %c0_19], %32 {strides = array<i32>} : memref<1x1xf32, #tpu.memory_space<vmem>>, vector<1x1xf32>,
    %c0_i32_20 = arith.constant 0 : i32
    %34 = arith.cmpi eq, %arg0, %c0_i32_20 : i32
    %35 = arith.extui %34 : i1 to i32
    %c0_i32_21 = arith.constant 0 : i32
    %36 = arith.cmpi ne, %35, %c0_i32_21 : i32
    scf.if %36 {
      %c0_22 = arith.constant 0 : index
      %c0_23 = arith.constant 0 : index
      %37 = vector.load %arg5[%c0_22, %c0_23] : memref<1x1xf32, #tpu.memory_space<vmem>>, vector<1x1xf32>
      %c0_24 = arith.constant 0 : index
      %c0_25 = arith.constant 0 : index
      %38 = vector.load %arg6[%c0_24, %c0_25] : memref<1x1xf32, #tpu.memory_space<vmem>>, vector<1x1xf32>
      %cst_26 = arith.constant 5.000000e-01 : f32
      %39 = vector.broadcast %cst_26 : f32 to vector<1x1xf32>
      %40 = arith.mulf %39, %38 : vector<1x1xf32>
      %41 = arith.addf %37, %40 : vector<1x1xf32>
      %c0_27 = arith.constant 0 : index
      %c0_28 = arith.constant 0 : index
      %42 = vector.load %arg7[%c0_27, %c0_28] : memref<1x1xf32, #tpu.memory_space<vmem>>, vector<1x1xf32>
      %43 = arith.divf %41, %42 : vector<1x1xf32>
      %c0_29 = arith.constant 0 : index
      %c0_30 = arith.constant 0 : index
      %44 = vector.load %arg4[%c0_29, %c0_30] : memref<1x1xf32, #tpu.memory_space<vmem>>, vector<1x1xf32>
      tpu.vector_store %arg4[%c0_29, %c0_30], %43 {strides = array<i32>} : memref<1x1xf32, #tpu.memory_space<vmem>>, vector<1x1xf32>,
    } else {
    }
    return
  }
  func.func @transform_0(%arg0: i32) -> (i32, i32) {
    %c0_i32 = arith.constant 0 : i32
    %c0_i32_0 = arith.constant 0 : i32
    return %arg0, %c0_i32 : i32, i32
  }
  func.func @transform_1(%arg0: i32) -> (i32, i32) {
    %c0_i32 = arith.constant 0 : i32
    %c0_i32_0 = arith.constant 0 : i32
    return %arg0, %c0_i32 : i32, i32
  }
  func.func @transform_2(%arg0: i32) -> (i32, i32) {
    %c0_i32 = arith.constant 0 : i32
    %c0_i32_0 = arith.constant 0 : i32
    return %arg0, %c0_i32 : i32, i32
  }
  func.func @transform_3(%arg0: i32) -> (i32, i32) {
    %c0_i32 = arith.constant 0 : i32
    %c0_i32_0 = arith.constant 0 : i32
    %c0_i32_1 = arith.constant 0 : i32
    return %c0_i32, %c0_i32_0 : i32, i32
  }
}

</mosaic_0001>

<bundles_post_ra>
// kernel: tpu_custom_call.1
= control target key start
LH: loop header
LB: loop body
LE: loop exit
PB: predicated region body
PF: predicated region fallthrough
CT: control target
= control target key end

     0   :  { %8 = vsyncpa [#allocation6], 0  ;;  %s355_s0 = inlined_call_operand.hbm [shape: f32[16,128], index: 0, kind: input, shape index: {}]   ;;  %s356_s1 = inlined_call_operand.hbm [shape: f32[16,128], index: 1, kind: input, shape index: {}]   ;;  %s357_s2 = inlined_call_operand.hbm [shape: f32[16,128], index: 2, kind: input, shape index: {}]   ;;  %s358_s3 = inlined_call_operand.hbm [shape: f32[1,1], index: 3, kind: output, shape index: {}]  }
   0x1   :  { %9 = vsyncpa [#allocation9], 0 }
   0x2   :  { %10 = vsyncpa [#allocation7], 0  ;;  %s257_s12 = smov [#allocation8]   ;;  %s258_s14 = smov [#allocation5]  }
   0x3   :  { %s28_s13 = sshll.u32 %s257_s12, 4  ;;  %s16_s15 = sshll.u32 %s258_s14, 4  ;;  %s29_s13 = int_to_ptr.vmem [resolvable:$true] %s28_s13  ;;  %s284_s15 = int_to_ptr.vmem [resolvable:$true] %s16_s15 }
   0x4   :  { %s163_s18 = scalar_lea.hbm %s356_s1, 256 }
   0x5   :  { %p164_p0 = scmp.ne.s32.totalorder %s356_s1, %s163_s18  ;;  %p167_p1 = scmp.lt.u32.totalorder %s163_s18, %s356_s1 }
   0x7   :  { %p169_p2 = pnand %p167_p1, %p164_p0 }
   0x9   :  { %172 = shalt.err (!%p169_p2)
}
   0xa   :  { %s173_s23 = scalar_lea.vmem %s29_s13, 256  ;;  %p178_p4 = scmp.lt.s32.totalorder %s29_s13, %s29_s13 }
   0xb   :  { %p174_p3 = scmp.ne.s32.totalorder %s29_s13, %s173_s23  ;;  %p179_p5 = scmp.lt.s32.totalorder %s173_s23, %s173_s23 }
   0xd   :  { %p180_p6 = por %p179_p5, %p178_p4 }
   0xf   :  { %p181_p7 = pnand %p180_p6, %p174_p3 }
  0x11   :  { %184 = shalt.err (!%p181_p7)
}
  0x12   :  { %s259_s24 = smov 128   ;;  %s260_s25 = smov 8  }
  0x13   :  { %34 = dma.hbm_to_vmem [thread:$0]  %s356_s1, 256, %s29_s13, [#allocation9], %s259_s24, %s259_s24, %s260_s25  }
  0x14   :  { %s185_s30 = scalar_lea.hbm %s355_s0, 256 }
  0x15   :  { %p186_p8 = scmp.ne.s32.totalorder %s355_s0, %s185_s30  ;;  %p189_p9 = scmp.lt.u32.totalorder %s185_s30, %s355_s0 }
  0x17   :  { %p191_p10 = pnand %p189_p9, %p186_p8 }
  0x19   :  { %194 = shalt.err (!%p191_p10)
}
  0x1a   :  { %s195_s8 = scalar_lea.vmem %s284_s15, 256  ;;  %p200_p12 = scmp.lt.s32.totalorder %s284_s15, %s284_s15 }
  0x1b   :  { %p196_p11 = scmp.ne.s32.totalorder %s284_s15, %s195_s8  ;;  %p201_p13 = scmp.lt.s32.totalorder %s195_s8, %s195_s8 }
  0x1d   :  { %p202_p0 = por %p201_p13, %p200_p12 }
  0x1f   :  { %p203_p1 = pnand %p202_p0, %p196_p11 }
  0x21   :  { %206 = shalt.err (!%p203_p1)
}
  0x22   :  { %22 = dma.hbm_to_vmem [thread:$0]  %s355_s0, 256, %s284_s15, [#allocation6], %s259_s24, %s259_s24, %s260_s25  }
  0x23   :  { %s261_s10 = smov [#allocation10]   ;;  %s207_s14 = scalar_lea.hbm %s357_s2, 256 }
  0x24   :  { %s40_s11 = sshll.u32 %s261_s10, 4  ;;  %p208_p2 = scmp.ne.s32.totalorder %s357_s2, %s207_s14  ;;  %s41_s11 = int_to_ptr.vmem [resolvable:$true] %s40_s11 }
  0x25   :  { %p211_p3 = scmp.lt.u32.totalorder %s207_s14, %s357_s2 }
  0x27   :  { %p213_p4 = pnand %p211_p3, %p208_p2 }
  0x29   :  { %216 = shalt.err (!%p213_p4)
}
  0x2a   :  { %s217_s20 = scalar_lea.vmem %s41_s11, 256  ;;  %p222_p6 = scmp.lt.s32.totalorder %s41_s11, %s41_s11 }
  0x2b   :  { %p218_p5 = scmp.ne.s32.totalorder %s41_s11, %s217_s20  ;;  %p223_p7 = scmp.lt.s32.totalorder %s217_s20, %s217_s20 }
  0x2d   :  { %p224_p8 = por %p223_p7, %p222_p6 }
  0x2f   :  { %p225_p9 = pnand %p224_p8, %p218_p5 }
  0x31   :  { %228 = shalt.err (!%p225_p9)
}
  0x32   :  { %46 = dma.hbm_to_vmem [thread:$0]  %s357_s2, 256, %s41_s11, [#allocation9], %s259_s24, %s259_s24, %s260_s25  }
  0x33   :  { %251 = dma.done.wait [#allocation6], 256  }
  0x34   :  { %252 = vsyncadd [#allocation6], 4294967040 }
  0x35   :  { %253 = dma.done.wait [#allocation9], 512  }
  0x36   :  { %254 = vsyncadd [#allocation9], 4294966784  ;;  %v64_v0 = vld [vmem:[#allocation10] sm:$0xff]  ;;  %v65_v1 = vld [vmem:[#allocation10 + $0x8] sm:$0xff]  ;;  %vm60_vm0 = vcmask 0   ;;  %v262_v17 = vmov 0.0  }
  0x37   :  { %v66_v2 = vld [vmem:[#allocation5] sm:$0xff]  ;;  %v67_v3 = vld [vmem:[#allocation5 + $0x8] sm:$0xff]  ;;  %v68_v4 = vld [vmem:[#allocation8] sm:$0xff]  ;;  %v108_v6 = vadd.f32 %v65_v1, %v64_v0  ;;  %61 = vst.msk [vmem:[#allocation2] sm:$0x1] %vm60_vm0, %v262_v17  ;;  %s263_s23 = smov [#allocation11]  }
  0x38   :  { %v69_v5 = vld [vmem:[#allocation8 + $0x8] sm:$0xff]  ;;  %v70_v7 = vsub.f32 %v66_v2, %v68_v4  ;;  %62 = vst.msk [vmem:[#allocation3] sm:$0x1] %vm60_vm0, %v262_v17  ;;  %63 = vst.msk [vmem:[#allocation4] sm:$0x1] %vm60_vm0, %v262_v17  ;;  %s138_s24 = sshll.u32 %s263_s23, 4  ;;  %s139_s24 = int_to_ptr.vmem [resolvable:$true] %s138_s24 }
  0x39   :  { %v71_v8 = vsub.f32 %v67_v3, %v69_v5  ;;  %109 = vadd.xlane.f32.xlu1 %v108_v6  ;;  %s229_s25 = scalar_lea.vmem %s139_s24, 16  ;;  %s233_s26 = scalar_lea.vmem %s139_s24, 32 }
  0x3a   :  { %v72_v10 = vmul.f32 %v70_v7, %v64_v0  ;;  %p230_p10 = scmp.ne.s32.totalorder %s139_s24, %s229_s25  ;;  %p234_p11 = scmp.lt.s32.totalorder %s139_s24, %s139_s24 }
  0x3b   :  { %v73_v9 = vmul.f32 %v71_v8, %v65_v1  ;;  %p235_p12 = scmp.lt.s32.totalorder %s233_s26, %s229_s25 }
  0x3c   :  { %v75_v11 = vand.u32 2147483647, %v72_v10  ;;  %v92_v13 = vmul.f32 %v72_v10, %v72_v10 }
  0x3d   :  { %v76_v12 = vand.u32 2147483647, %v73_v9  ;;  %v93_v14 = vmul.f32 %v73_v9, %v73_v9  ;;  %p236_p13 = por %p235_p12, %p234_p11 }
  0x3e   :  { %v74_v39 = vld [vmem:[#allocation2] sm:$0x1] }
  0x3f   :  { %v77_v15 = vadd.f32 %v76_v12, %v75_v11  ;;  %v94_v16 = vadd.f32 %v93_v14, %v92_v13  ;;  %v91_v42 = vld [vmem:[#allocation3] sm:$0x1]  ;;  %v107_v43 = vld [vmem:[#allocation4] sm:$0x1]  ;;  %p237_p0 = pnand %p236_p13, %p230_p10 }
  0x41   :  { %78 = vadd.xlane.f32.xlu0 %v77_v15 }
  0x45   :  { %95 = vadd.xlane.f32.xlu0 %v94_v16 }
  0xc6   :  { %v110_v18 = vpop.xlane.xlu1 %109 }
  0xc7   :  { %v111_v19 = vrot.slane %v110_v18, 4 }
  0xc9   :  { %v112_v20 = vadd.f32 %v111_v19, %v110_v18 }
  0xcb   :  { %v113_v24 = vrot.slane %v112_v20, 2 }
  0xcd   :  { %v114_v30 = vadd.f32 %v113_v24, %v112_v20 }
  0xce   :  { %v79_v21 = vpop.xlane.xlu0 %78 }
  0xcf   :  { %v80_v22 = vrot.slane %v79_v21, 4  ;;  %v115_v35 = vrot.slane %v114_v30, 1 }
  0xd1   :  { %v81_v23 = vadd.f32 %v80_v22, %v79_v21  ;;  %v116_v38 = vadd.f32 %v115_v35, %v114_v30 }
  0xd2   :  { %v96_v25 = vpop.xlane.xlu0 %95 }
  0xd3   :  { %v82_v26 = vrot.slane %v81_v23, 2  ;;  %v97_v27 = vrot.slane %v96_v25, 4 }
  0xd5   :  { %v98_v28 = vadd.f32 %v97_v27, %v96_v25  ;;  %v83_v29 = vadd.f32 %v82_v26, %v81_v23 }
  0xd7   :  { %v99_v31 = vrot.slane %v98_v28, 2  ;;  %v84_v32 = vrot.slane %v83_v29, 1 }
  0xd9   :  { %v100_v33 = vadd.f32 %v99_v31, %v98_v28  ;;  %v85_v34 = vadd.f32 %v84_v32, %v83_v29 }
  0xdb   :  { %148 = vpush %v85_v34  ;;  %v101_v36 = vrot.slane %v100_v33, 1 }
  0xdd   :  { %v102_v37 = vadd.f32 %v101_v36, %v100_v33 }
  0xdf   :  { %150 = vpush %v102_v37 }
  0xe0   :  { %152 = vpush %v116_v38 }
 0x10c   :  { %s149_s2 = spop %148 }
 0x10d   :  { %v87_v40 = vstv %s149_s2 }
 0x10e   :  { %v88_v41 = vadd.f32 %v87_v40, %v74_v39 }
 0x110   :  { %90 = vst.msk [vmem:[#allocation2] sm:$0x1] %vm60_vm0, %v88_v41  ;;  %s151_s21 = spop %150 }
 0x111   :  { %v104_v44 = vstv %s151_s21  ;;  %s153_s22 = spop %152 }
 0x112   :  { %v105_v45 = vadd.f32 %v104_v44, %v91_v42  ;;  %v118_v46 = vstv %s153_s22 }
 0x113   :  { %v119_v47 = vadd.f32 %v118_v46, %v107_v43 }
 0x114   :  { %106 = vst.msk [vmem:[#allocation3] sm:$0x1] %vm60_vm0, %v105_v45 }
 0x115   :  { %120 = vst.msk [vmem:[#allocation4] sm:$0x1] %vm60_vm0, %v119_v47 }
 0x117   :  { %v124_v51 = vld [vmem:[#allocation2] sm:$0x1] }
 0x11b   :  { %v125_v49 = vld [vmem:[#allocation3] sm:$0x1] }
 0x11c   :  { %v128_v48 = vld [vmem:[#allocation4] sm:$0x1]  ;;  %v126_v50 = vmul.f32 0.5, %v125_v49 }
 0x11d   :  { %161 = vrcp.f32 %v128_v48 }
 0x11e   :  { %v127_v52 = vadd.f32 %v126_v50, %v124_v51 }
 0x127   :  { %v162_v53 = vpop.eup %161 }
 0x128   :  { %v130_v54 = vmul.f32 %v162_v53, %v127_v52 }
 0x12a   :  { %131 = vst.msk [vmem:[#allocation11] sm:$0x1] %vm60_vm0, %v130_v54 }
 0x12b   :  { %240 = shalt.err (!%p237_p0)
}
 0x12c   :  { %s241_s29 = scalar_lea.hbm %s358_s3, 16 }
 0x12d   :  { %p242_p1 = scmp.ne.s32.totalorder %s358_s3, %s241_s29  ;;  %p245_p2 = scmp.lt.u32.totalorder %s241_s29, %s358_s3 }
 0x12f   :  { %p247_p3 = pnand %p245_p2, %p242_p1 }
 0x131   :  { %250 = shalt.err (!%p247_p3)
}
 0x132   :  { %141 = dma.vmem_to_hbm [thread:$0]  %s139_s24, 16, %s358_s3, [#allocation7]  }
 0x133   :  { %255 = dma.done.wait [#allocation7], 16  }
 0x134   :  { %256 = vsyncadd [#allocation7], 4294967280 }
 0x135   :  { %145 = vsyncpa [#allocation6], 1 }
 0x136   :  { %146 = vsyncpa [#allocation9], 1 }
 0x137   :  { %147 = vsyncpa [#allocation7], 1 }

</bundles_post_ra>
